<compile_context>
chip_gen: v7x
topology: tpu7x:2x2x1
jax: 0.10.0
libtpu: 0.0.40
codegen_flags: <defaults>
</compile_context>

<pallas_src>
import jax
import jax.numpy as jnp
from jax.experimental import pallas as pl
from jax.experimental.pallas import tpu as pltpu

IN_DIM = 84
HID_DIM = 58
OUT_DIM = 10
OUT_PAD = 128        # lane-dense padded class axis (full-lane, unmasked stores)
NEG_SLOPE = 0.01     # nn.LeakyReLU default negative_slope
PAD_LOGIT = -1e30    # large negative but FINITE (avoids -inf - -inf NaN corner)


def _round_up(n, m):
    return ((n + m - 1) // m) * m


def _class_projector_kernel(x_ref, w1_ref, b1_ref, w2_ref, b2_ref, o_ref):
    # bf16 MXU feeds (cheap in-VMEM cast); accumulate in f32 on the MXU.
    x = x_ref[...].astype(jnp.bfloat16)                       # [TB, 84]

    # fc1: [TB,84] @ [84,58] + [1,58]; LeakyReLU as a single vmax.
    h = jnp.dot(x, w1_ref[...], preferred_element_type=jnp.float32) + b1_ref[...]
    h = jnp.maximum(h, NEG_SLOPE * h)

    # fc2 over the lane-padded class axis: [TB,58] @ [58,128] + [1,128].
    # Padded columns: w2 == 0, bias == -1e30 -> logits stay hugely negative.
    z = jnp.dot(h.astype(jnp.bfloat16), w2_ref[...],
                preferred_element_type=jnp.float32) + b2_ref[...]
    z = jnp.maximum(z, NEG_SLOPE * z)        # padded lanes: ~-1e28, still finite

    # Numerically-stable softmax over all 128 lanes; padded lanes exp -> 0
    # exactly, so normalization of the 10 real classes is unchanged.
    m = jnp.max(z, axis=-1, keepdims=True)
    e = jnp.exp(z - m)
    denom = jnp.sum(e, axis=-1, keepdims=True)
    # approx reciprocal runs on the EUP slot (frees VALU); error ~1e-3 rel.
    o_ref[...] = (e * pl.reciprocal(denom, approx=True)).astype(o_ref.dtype)


def class_projector(x, w1, b1, w2, b2, *, tb=1024):
    """x: [B, 84] f32; w1: [84, 58]; b1: [1|*, 58]; w2: [58, 10]; b2: [1|*, 10]."""
    B = x.shape[0]

    # ---- one-time (tiny) parameter prep -------------------------------------
    w1_bf = jnp.asarray(w1, jnp.bfloat16)                                  # [84, 58]
    b1_f = jnp.asarray(b1, jnp.float32).reshape(1, HID_DIM)                # [1, 58]
    # Lane-dense fc2: zero weights + large negative finite bias in padded cols.
    w2_pad = jnp.zeros((HID_DIM, OUT_PAD), jnp.bfloat16)
    w2_pad = w2_pad.at[:, :OUT_DIM].set(jnp.asarray(w2, jnp.bfloat16))
    b2_pad = jnp.full((1, OUT_PAD), PAD_LOGIT, jnp.float32)
    b2_pad = b2_pad.at[:, :OUT_DIM].set(jnp.asarray(b2, jnp.float32).reshape(1, OUT_DIM))

    # ---- batch tiling --------------------------------------------------------
    TB = min(tb, _round_up(max(B, 1), 8))
    # v7x has 2 TensorCores: guarantee >=2 parallel grid steps when B allows.
    if B > 16:
        TB = min(TB, _round_up(pl.cdiv(B, 2), 8))
    TB = _round_up(TB, 8)

    # No input/output padding passes: cdiv grid, boundary block clamped by Pallas.
    grid = (pl.cdiv(B, TB),)

    cost = pl.CostEstimate(
        flops=2 * B * (IN_DIM * HID_DIM + HID_DIM * OUT_PAD),
        transcendentals=B * (OUT_PAD + 1),        # exp lanes + reciprocal per row
        bytes_accessed=(B * IN_DIM * 4 + B * OUT_PAD * 4
                        + (IN_DIM * HID_DIM + HID_DIM * OUT_PAD) * 2
                        + (HID_DIM + OUT_PAD) * 4),
    )

    out = pl.pallas_call(
        _class_projector_kernel,
        out_shape=jax.ShapeDtypeStruct((B, OUT_PAD), jnp.float32),
        grid_spec=pltpu.PrefetchScalarGridSpec(
            num_scalar_prefetch=0,
            grid=grid,
            in_specs=[
                # x: tiled along the batch grid axis -> auto double-buffered.
                pl.BlockSpec((TB, IN_DIM), lambda i: (i, 0)),
                # Weights/biases: constant index maps -> DMA'd once, resident
                # in VMEM (~25 KB total) and reused by every batch tile.
                pl.BlockSpec((IN_DIM, HID_DIM), lambda i: (0, 0)),
                pl.BlockSpec((1, HID_DIM), lambda i: (0, 0)),
                pl.BlockSpec((HID_DIM, OUT_PAD), lambda i: (0, 0)),
                pl.BlockSpec((1, OUT_PAD), lambda i: (0, 0)),
            ],
            out_specs=pl.BlockSpec((TB, OUT_PAD), lambda i: (i, 0)),
        ),
        compiler_params=pltpu.CompilerParams(
            # Independent batch tiles: shard the grid across both TCs on v7x.
            dimension_semantics=("parallel",),
        ),
        cost_estimate=cost,
    )(x, w1_bf, b1_f, w2_pad, b2_pad)

    # Drop the padded classes (their probability is exactly 0).
    return out[:, :OUT_DIM]


def init_params(key):
    """Deterministic init mimicking PyTorch Linear default (U[-1/sqrt(fan_in), +])."""
    k1, k2, k3, k4 = jax.random.split(key, 4)
    bound1 = 1.0 / (IN_DIM ** 0.5)
    bound2 = 1.0 / (HID_DIM ** 0.5)
    # Stored already transposed: [in_features, out_features].
    w1 = jax.random.uniform(k1, (IN_DIM, HID_DIM), jnp.float32, -bound1, bound1)
    b1 = jax.random.uniform(k2, (1, HID_DIM), jnp.float32, -bound1, bound1)
    w2 = jax.random.uniform(k3, (HID_DIM, OUT_DIM), jnp.float32, -bound2, bound2)
    b2 = jax.random.uniform(k4, (1, OUT_DIM), jnp.float32, -bound2, bound2)
    return w1, b1, w2, b2


def reference(x, w1, b1, w2, b2):
    h = x @ w1 + b1
    h = jnp.where(h >= 0, h, NEG_SLOPE * h)
    z = h @ w2 + b2
    z = jnp.where(z >= 0, z, NEG_SLOPE * z)
    return jax.nn.softmax(z, axis=-1)


if __name__ == "__main__":
    key = jax.random.PRNGKey(0)
    kx, kp = jax.random.split(key)
    w1, b1, w2, b2 = init_params(kp)

    # Small primary test (single grid step).
    B = 8
    x = jax.random.normal(kx, (B, IN_DIM), jnp.float32)
    out = jax.block_until_ready(class_projector(x, w1, b1, w2, b2))
    ref = reference(x, w1, b1, w2, b2)
    assert out.shape == (B, OUT_DIM)
    # Tolerance covers bf16 MXU feeds + approx (EUP) reciprocal; typical
    # deviation on softmax probabilities is < 1e-3.
    assert jnp.allclose(out, ref, atol=5e-3, rtol=5e-3), "mismatch vs reference (B=8)"
    assert jnp.allclose(jnp.sum(out, axis=-1), 1.0, atol=5e-3), "rows must sum to ~1"

    # Ragged / multi-tile test: B not a multiple of the tile size, >=2 grid
    # steps (exercises the cdiv boundary block + megacore split path).
    B2 = 600
    x2 = jax.random.normal(jax.random.PRNGKey(1), (B2, IN_DIM), jnp.float32)
    out2 = jax.block_until_ready(class_projector(x2, w1, b1, w2, b2))
    ref2 = reference(x2, w1, b1, w2, b2)
    assert out2.shape == (B2, OUT_DIM)
    assert not jnp.any(jnp.isnan(out2)), "NaN leaked from the padded/tail path"
    assert jnp.allclose(out2, ref2, atol=5e-3, rtol=5e-3), "mismatch vs reference (B=600)"

    print("KERNEL_OK")
</pallas_src>

<mosaic_0001>
module attributes {stable_mosaic.version = 11 : i64} {
  func.func @_class_projector_kernel(%arg0: i32, %arg1: memref<8x84xf32, #tpu.memory_space<vmem>>, %arg2: memref<84x58xbf16, #tpu.memory_space<vmem>>, %arg3: memref<1x58xf32, #tpu.memory_space<vmem>>, %arg4: memref<58x128xbf16, #tpu.memory_space<vmem>>, %arg5: memref<1x128xf32, #tpu.memory_space<vmem>>, %arg6: memref<8x128xf32, #tpu.memory_space<vmem>>) attributes {dimension_semantics = [#tpu.dimension_semantics<parallel>], iteration_bounds = array<i64: 1>, scalar_prefetch = 0 : i64, scratch_operands = 0 : i64, tpu.core_type = #tpu.core_type<tc>, window_params = [{transform_indices = @transform_0, window_bounds = array<i64: 8, 84>}, {pipeline_mode = #tpu.pipeline_mode<synchronous>, transform_indices = @transform_1, window_bounds = array<i64: 84, 58>}, {pipeline_mode = #tpu.pipeline_mode<synchronous>, transform_indices = @transform_2, window_bounds = array<i64: 1, 58>}, {pipeline_mode = #tpu.pipeline_mode<synchronous>, transform_indices = @transform_3, window_bounds = array<i64: 58, 128>}, {pipeline_mode = #tpu.pipeline_mode<synchronous>, transform_indices = @transform_4, window_bounds = array<i64: 1, 128>}, {transform_indices = @transform_5, window_bounds = array<i64: 8, 128>}]} {
    %c0 = arith.constant 0 : index
    %c0_0 = arith.constant 0 : index
    %0 = vector.load %arg1[%c0, %c0_0] : memref<8x84xf32, #tpu.memory_space<vmem>>, vector<8x84xf32>
    %1 = arith.truncf %0 : vector<8x84xf32> to vector<8x84xbf16>
    %c0_1 = arith.constant 0 : index
    %c0_2 = arith.constant 0 : index
    %2 = vector.load %arg2[%c0_1, %c0_2] : memref<84x58xbf16, #tpu.memory_space<vmem>>, vector<84x58xbf16>
    %cst = arith.constant dense<0.000000e+00> : vector<8x58xf32>
    %3 = tpu.matmul %1, %2, %cst {dimension_numbers = #tpu.dot_dimension_numbers<[1], [0], [0], [1], [0, 0, 1, 1], [], []>} : vector<8x84xbf16>, vector<84x58xbf16>, vector<8x58xf32> -> vector<8x58xf32>
    %c0_3 = arith.constant 0 : index
    %c0_4 = arith.constant 0 : index
    %4 = vector.load %arg3[%c0_3, %c0_4] : memref<1x58xf32, #tpu.memory_space<vmem>>, vector<1x58xf32>
    %5 = vector.broadcast %4 : vector<1x58xf32> to vector<8x58xf32>
    %6 = arith.addf %3, %5 : vector<8x58xf32>
    %cst_5 = arith.constant 0.00999999977 : f32
    %7 = vector.broadcast %cst_5 : f32 to vector<8x58xf32>
    %8 = arith.mulf %7, %6 : vector<8x58xf32>
    %9 = arith.maximumf %6, %8 : vector<8x58xf32>
    %10 = arith.truncf %9 : vector<8x58xf32> to vector<8x58xbf16>
    %c0_6 = arith.constant 0 : index
    %c0_7 = arith.constant 0 : index
    %11 = vector.load %arg4[%c0_6, %c0_7] : memref<58x128xbf16, #tpu.memory_space<vmem>>, vector<58x128xbf16>
    %cst_8 = arith.constant dense<0.000000e+00> : vector<8x128xf32>
    %12 = tpu.matmul %10, %11, %cst_8 {dimension_numbers = #tpu.dot_dimension_numbers<[1], [0], [0], [1], [0, 0, 1, 1], [], []>} : vector<8x58xbf16>, vector<58x128xbf16>, vector<8x128xf32> -> vector<8x128xf32>
    %c0_9 = arith.constant 0 : index
    %c0_10 = arith.constant 0 : index
    %13 = vector.load %arg5[%c0_9, %c0_10] : memref<1x128xf32, #tpu.memory_space<vmem>>, vector<1x128xf32>
    %14 = vector.broadcast %13 : vector<1x128xf32> to vector<8x128xf32>
    %15 = arith.addf %12, %14 : vector<8x128xf32>
    %cst_11 = arith.constant 0.00999999977 : f32
    %16 = vector.broadcast %cst_11 : f32 to vector<8x128xf32>
    %17 = arith.mulf %16, %15 : vector<8x128xf32>
    %18 = arith.maximumf %15, %17 : vector<8x128xf32>
    %cst_12 = arith.constant dense<0xFF800000> : vector<8xf32>
    %19 = vector.multi_reduction <maximumf>, %18, %cst_12 [1] : vector<8x128xf32> to vector<8xf32>
    %20 = vector.shape_cast %19 : vector<8xf32> to vector<8x1xf32>
    %21 = vector.broadcast %20 : vector<8x1xf32> to vector<8x128xf32>
    %22 = arith.subf %18, %21 : vector<8x128xf32>
    %23 = math.exp %22 : vector<8x128xf32>
    %cst_13 = arith.constant dense<0.000000e+00> : vector<8xf32>
    %24 = vector.multi_reduction <add>, %23, %cst_13 [1] : vector<8x128xf32> to vector<8xf32>
    %25 = vector.shape_cast %24 : vector<8xf32> to vector<8x1xf32>
    %26 = tpu.reciprocal %25 {approx = true} : vector<8x1xf32> -> vector<8x1xf32>
    %27 = vector.broadcast %26 : vector<8x1xf32> to vector<8x128xf32>
    %28 = arith.mulf %23, %27 : vector<8x128xf32>
    %c0_14 = arith.constant 0 : index
    %c0_15 = arith.constant 0 : index
    %29 = vector.load %arg6[%c0_14, %c0_15] : memref<8x128xf32, #tpu.memory_space<vmem>>, vector<8x128xf32>
    tpu.vector_store %arg6[%c0_14, %c0_15], %28 {strides = array<i32>} : memref<8x128xf32, #tpu.memory_space<vmem>>, vector<8x128xf32>,
    return
  }
  func.func @transform_0(%arg0: i32) -> (i32, i32) {
    %c0_i32 = arith.constant 0 : i32
    %c0_i32_0 = arith.constant 0 : i32
    return %arg0, %c0_i32 : i32, i32
  }
  func.func @transform_1(%arg0: i32) -> (i32, i32) {
    %c0_i32 = arith.constant 0 : i32
    %c0_i32_0 = arith.constant 0 : i32
    %c0_i32_1 = arith.constant 0 : i32
    return %c0_i32, %c0_i32_0 : i32, i32
  }
  func.func @transform_2(%arg0: i32) -> (i32, i32) {
    %c0_i32 = arith.constant 0 : i32
    %c0_i32_0 = arith.constant 0 : i32
    %c0_i32_1 = arith.constant 0 : i32
    return %c0_i32, %c0_i32_0 : i32, i32
  }
  func.func @transform_3(%arg0: i32) -> (i32, i32) {
    %c0_i32 = arith.constant 0 : i32
    %c0_i32_0 = arith.constant 0 : i32
    %c0_i32_1 = arith.constant 0 : i32
    return %c0_i32, %c0_i32_0 : i32, i32
  }
  func.func @transform_4(%arg0: i32) -> (i32, i32) {
    %c0_i32 = arith.constant 0 : i32
    %c0_i32_0 = arith.constant 0 : i32
    %c0_i32_1 = arith.constant 0 : i32
    return %c0_i32, %c0_i32_0 : i32, i32
  }
  func.func @transform_5(%arg0: i32) -> (i32, i32) {
    %c0_i32 = arith.constant 0 : i32
    %c0_i32_0 = arith.constant 0 : i32
    return %arg0, %c0_i32 : i32, i32
  }
}

</mosaic_0001>

<bundles_post_ra>
// kernel: tpu_custom_call.1
= control target key start
LH: loop header
LB: loop body
LE: loop exit
PB: predicated region body
PF: predicated region fallthrough
CT: control target
= control target key end

     0   :  { %v333_v1 = vmov 0.0   ;;  %vm334_vm0 = vmmov 0   ;;  %s417_s0 = inlined_call_operand.vmem [shape: f32[8,84], index: 0, kind: input, shape index: {}]   ;;  %s418_s1 = inlined_call_operand.vmem [shape: bf16[84,58], index: 1, kind: input, shape index: {}]   ;;  %s419_s2 = inlined_call_operand.vmem [shape: f32[1,58], index: 2, kind: input, shape index: {}]   ;;  %s420_s3 = inlined_call_operand.vmem [shape: bf16[58,128], index: 3, kind: input, shape index: {}]   ;;  %s421_s4 = inlined_call_operand.vmem [shape: f32[1,128], index: 4, kind: input, shape index: {}]   ;;  %s422_s5 = inlined_call_operand.hbm [shape: f32[8,128], index: 5, kind: output, shape index: {}]  }
   0x1   :  { %v295_v0 = vld [vmem:[%s418_s1] sm:$0xff]   ;;  %264 = vmatprep.subr.bf16.mxu0 %v333_v1  ;;  %280 = vmatprep.subr.bf16.mxu1 %v333_v1  ;;  %v296_v2 = vld [vmem:[%s418_s1 + $0x8] sm:$0xff]   ;;  %v297_v3 = vld [vmem:[%s418_s1 + $0x10] sm:$0xff]  }
   0x2   :  { %265 = vmatpush3.bf16.msra.mxu0 %v295_v0  ;;  %276 = vmatprep.mubr.msk.bf16.mxu0 %vm334_vm0, %v333_v1  ;;  %v301_v4 = vld [vmem:[%s420_s3] sm:$0xff]   ;;  %v302_v5 = vld [vmem:[%s420_s3 + $0x8] sm:$0xff]  }
   0x3   :  { %266 = vmatprep.subr.bf16.mxu0 %v333_v1  ;;  %288 = vmatprep.mubr.msk.bf16.mxu1 %vm334_vm0, %v333_v1 }
   0x4   :  { %281 = vmatpush3.bf16.msra.mxu1 %v301_v4 }
   0x5   :  { %282 = vmatprep.subr.bf16.mxu1 %v333_v1 }
   0x6   :  { %267 = vmatpush3.bf16.msra.mxu0 %v296_v2 }
   0x7   :  { %268 = vmatprep.subr.bf16.mxu0 %v333_v1 }
   0x8   :  { %10 = vsyncpa [#allocation3], 0  ;;  %v298_v6 = vld [vmem:[%s418_s1 + $0x18] sm:$0xff]   ;;  %283 = vmatpush3.bf16.msra.mxu1 %v302_v5  ;;  %v299_v7 = vld [vmem:[%s418_s1 + $0x20] sm:$0xff]   ;;  %vm79_vm1 = vcmask 1041408   ;;  %vm75_vm2 = vcmask 687104  }
   0x9   :  { %284 = vmatprep.subr.bf16.mxu1 %v333_v1  ;;  %v300_v8 = vld [vmem:[%s418_s1 + $0x28] ss:$0 sps:$4 sm:$0x33]   ;;  %v22_v9 = vld [vmem:[%s417_s0] sm:$0xff]  ;;  %v303_v12 = vld [vmem:[%s420_s3 + $0x10] sm:$0xff]   ;;  %vm168_vm3 = vcmask 1044480  }
   0xa   :  { %269 = vmatpush3.bf16.msra.mxu0 %v297_v3  ;;  %v81_v10 = vsel %vm79_vm1, %v300_v8, 0  ;;  %v23_v11 = vpack.c.bf16 %v22_v9, %v22_v9  ;;  %v304_v13 = vld [vmem:[%s420_s3 + $0x18] sm:$0x1f]   ;;  %v238_v15 = vld [vmem:[%s419_s2] ss:$0 sm:$0xff]  ;;  %vm164_vm4 = vcmask 474112  }
   0xb   :  { %270 = vmatprep.subr.bf16.mxu0 %v333_v1  ;;  %v170_v14 = vsel %vm168_vm3, %v304_v13, 0  ;;  %v246_v24 = vld [vmem:[%s421_s4] ss:$0 sm:$0xff]  ;;  %s335_s2 = smov [#allocation2]  }
   0xc   :  { %285 = vmatpush3.bf16.msra.mxu1 %v303_v12  ;;  %s230_s3 = sshll.u32 %s335_s2, 4  ;;  %s231_s3 = int_to_ptr.vmem [resolvable:$true] %s230_s3 }
   0xd   :  { %286 = vmatprep.subr.bf16.mxu1 %v333_v1  ;;  %s309_s4 = scalar_lea.vmem %s231_s3, 128  ;;  %p314_p1 = scmp.lt.s32.totalorder %s231_s3, %s231_s3 }
   0xe   :  { %271 = vmatpush3.bf16.msra.mxu0 %v298_v6  ;;  %p310_p0 = scmp.ne.s32.totalorder %s231_s3, %s309_s4  ;;  %p315_p2 = scmp.lt.s32.totalorder %s309_s4, %s309_s4 }
   0xf   :  { %272 = vmatprep.subr.bf16.mxu0 %v333_v1 }
  0x10   :  { %287 = vmatpush3.bf16.msra.mxu1 %v170_v14  ;;  %p316_p3 = por %p315_p2, %p314_p1 }
  0x12   :  { %273 = vmatpush3.bf16.msra.mxu0 %v299_v7  ;;  %p317_p4 = pnand %p316_p3, %p310_p0 }
  0x13   :  { %274 = vmatprep.subr.bf16.mxu0 %v333_v1 }
  0x16   :  { %275 = vmatpush3.bf16.msra.mxu0 %v81_v10 }
  0x19   :  { %277 = vmatmul.mubr.msk.bf16.vlgmr.msra.gmra.mrb[0].mxu0 %vm75_vm2, %v23_v11 }
  0xec   :  { %v117_v16 = vpop.f32.mrb[0].mxu0 }
  0xed   :  { %v118_v17 = vadd.f32 %v238_v15, %v117_v16  ;;  %v278_v18 = vpop.f32.mrb[1].mxu0 }
  0xee   :  { %v120_v19 = vpop.f32.mrb[2].mxu0 }
  0xef   :  { %v123_v20 = vmul.f32 0.01, %v118_v17  ;;  %v279_v21 = vpop.f32.mrb[3].mxu0 }
  0xf1   :  { %v124_v22 = vmax.f32 %v118_v17, %v123_v20 }
  0xf3   :  { %v125_v23 = vpack.c.bf16 %v124_v22, %v124_v22 }
  0xf5   :  { %289 = vmatmul.mubr.msk.bf16.vlgmr.msra.gmra.mrb[0].mxu1 %vm164_vm4, %v125_v23 }
 0x1c8   :  { %v206_v25 = vpop.f32.mrb[0].mxu1 }
 0x1c9   :  { %v207_v26 = vadd.f32 %v246_v24, %v206_v25  ;;  %v290_v27 = vpop.f32.mrb[1].mxu1 }
 0x1ca   :  { %v209_v28 = vpop.f32.mrb[2].mxu1 }
 0x1cb   :  { %v212_v29 = vmul.f32 0.01, %v207_v26  ;;  %v291_v30 = vpop.f32.mrb[3].mxu1 }
 0x1cd   :  { %v213_v31 = vmax.f32 %v207_v26, %v212_v29 }
 0x1cf   :  { %214 = vmax.xlane.f32.xlu0 %v213_v31 }
 0x25c   :  { %v215_v32 = vpop.xlane.xlu0 %214 }
 0x25d   :  { %v216_v33 = vsub.f32 %v213_v31, %v215_v32 }
 0x25f   :  { %v217_v34 = vmul.f32 1.442695, %v216_v33 }
 0x261   :  { %305 = vpow2.f32 %v217_v34 }
 0x26b   :  { %v306_v35 = vpop.eup %305 }
 0x26c   :  { %219 = vadd.xlane.f32.xlu0 %v306_v35 }
 0x2f9   :  { %v220_v36 = vpop.xlane.xlu0 %219 }
 0x2fa   :  { %307 = vrcp.f32 %v220_v36 }
 0x304   :  { %v308_v37 = vpop.eup %307 }
 0x305   :  { %v222_v38 = vmul.f32 %v308_v37, %v306_v35 }
 0x307   :  { %223 = vst [vmem:[#allocation2] sm:$0xff] %v222_v38 }
 0x308   :  { %320 = shalt.err (!%p317_p4)
}
 0x309   :  { %s321_s19 = scalar_lea.hbm %s422_s5, 128 }
 0x30a   :  { %p322_p5 = scmp.ne.s32.totalorder %s422_s5, %s321_s19  ;;  %p325_p6 = scmp.lt.u32.totalorder %s321_s19, %s422_s5 }
 0x30c   :  { %p327_p7 = pnand %p325_p6, %p322_p5 }
 0x30e   :  { %330 = shalt.err (!%p327_p7)
}
 0x30f   :  { %233 = dma.vmem_to_hbm [thread:$0]  %s231_s3, 128, %s422_s5, [#allocation3]  }
 0x310   :  { %331 = dma.done.wait [#allocation3], 128  }
 0x311   :  { %332 = vsyncadd [#allocation3], 4294967168 }
 0x312   :  { %237 = vsyncpa [#allocation3], 1 }

</bundles_post_ra>
